<compile_context>
chip_gen: v5e
topology: v5e:2x2
jax: 0.10.0
libtpu: 0.0.40
codegen_flags: <defaults>
</compile_context>

<pallas_src>
import jax
import jax.numpy as jnp
from jax import lax
from jax.experimental import pallas as pl
from jax.experimental.pallas import tpu as pltpu

# ---------------- problem sizes (small, consistent with the module) ----------
N_NODES = 16         # number of nodes
N_EDGES = 64         # number of edges
C_IN = 4             # in_irreps  = "4x0e"
C_SH = 4             # sh_irreps  = "4x0e"
C_OUT = 8            # out_irreps = "8x0e"
N_PATH = C_IN * C_SH                 # 16 (i,j) scalar paths
N_EDGE_FEAT = 16                     # n_edge_features
WEIGHT_NUMEL = C_IN * C_SH * C_OUT   # tp.weight_numel = 128
ALPHA = 1.0 / float(C_IN * C_SH) ** 0.5
BN_EPS = 1e-5

assert C_SH & (C_SH - 1) == 0 and C_OUT & (C_OUT - 1) == 0, "need powers of two"
SH_SHIFT = C_SH.bit_length() - 1     # log2(C_SH)  -> p // C_SH  == p >> SH_SHIFT
OUT_SHIFT = C_OUT.bit_length() - 1   # log2(C_OUT) -> q // C_OUT == q >> OUT_SHIFT


def tpconv_kernel(node_c_ref, node_res_ref, efeat_ref, eidx_ref, invc_ref,
                  w1_ref, b1_ref, w2_ref, b2_ref, gamma_ref, beta_ref,
                  out_ref, acc_ref):
    t = pl.program_id(0)
    cdt = w1_ref.dtype                      # MXU compute dtype (bf16 or f32)

    @pl.when(t == 0)
    def _init():
        acc_ref[...] = jnp.zeros_like(acc_ref)

    node_c = node_c_ref[...]                # [N, Cin]      cdt
    ef = efeat_ref[...]                     # [TE, F+Csh]   cdt  (packed: 1 DMA)
    eattr = ef[:, :N_EDGE_FEAT]             # [TE, F]
    sh = ef[:, N_EDGE_FEAT:]                # [TE, Csh]
    eidx = eidx_ref[...]                    # [TE, 2]       int32 (packed: 1 DMA)
    src = eidx[:, 0:1]                      # [TE, 1]
    dst = eidx[:, 1:2]                      # [TE, 1]

    n_nodes = node_c.shape[0]
    te = ef.shape[0]

    # ---- per-tile one-hots, in-register (no O(E*N) HBM traffic) ----
    node_iota = lax.broadcasted_iota(jnp.int32, (te, n_nodes), 1)
    oh_dst = (dst == node_iota).astype(cdt)              # [TE, N] gather operand
    oh_src = (src == node_iota).astype(jnp.float32)      # [TE, N] scatter operand (f32)

    # ---- gather node_attr[edge_dst] on the MXU ----
    x_dst = jnp.dot(oh_dst, node_c,
                    preferred_element_type=jnp.float32).astype(cdt)   # [TE, Cin]

    # ---- fc: Linear -> ReLU -> Linear (per-edge TP weights), f32 accumulation ----
    h = jnp.dot(eattr, w1_ref[...], preferred_element_type=jnp.float32) + b1_ref[...]
    h = jnp.maximum(h, 0.0)
    w = jnp.dot(h.astype(cdt), w2_ref[...],
                preferred_element_type=jnp.float32) + b2_ref[...]      # [TE, WN] f32

    # ---- selection constants built in registers (Csh, Cout powers of two) ----
    p_col = lax.broadcasted_iota(jnp.int32, (C_IN, N_PATH), 1)
    i_row = lax.broadcasted_iota(jnp.int32, (C_IN, N_PATH), 0)
    xsel = ((p_col >> SH_SHIFT) == i_row).astype(cdt)                  # [Cin, 16]
    p_col2 = lax.broadcasted_iota(jnp.int32, (C_SH, N_PATH), 1)
    j_row = lax.broadcasted_iota(jnp.int32, (C_SH, N_PATH), 0)
    shsel = ((p_col2 & (C_SH - 1)) == j_row).astype(cdt)               # [Csh, 16]
    q_col = lax.broadcasted_iota(jnp.int32, (N_PATH, WEIGHT_NUMEL), 1)
    p_row = lax.broadcasted_iota(jnp.int32, (N_PATH, WEIGHT_NUMEL), 0)
    rep = ((q_col >> OUT_SHIFT) == p_row).astype(jnp.float32)          # [16, WN]

    # ---- fused tensor-product path: xs[e,p] = x_dst[e, p//Csh] * sh[e, p%Csh] ----
    xs = (jnp.dot(x_dst, xsel, preferred_element_type=jnp.float32) *
          jnp.dot(sh, shsel, preferred_element_type=jnp.float32))      # [TE, 16] f32
    xs_rep = jnp.dot(xs, rep, preferred_element_type=jnp.float32)      # [TE, WN] f32
    prod = w * xs_rep                                                  # [TE, WN] f32

    # ---- scatter-sum over edge_src into the lane-dense path-space accumulator ----
    acc_ref[...] += lax.dot_general(oh_src, prod, (((0,), (0,)), ((), ())),
                                    preferred_element_type=jnp.float32)  # [N, WN]

    # ---- finalize once: osel projection (alpha folded in), mean, residual, BN ----
    @pl.when(t == pl.num_programs(0) - 1)
    def _finalize():
        q_row = lax.broadcasted_iota(jnp.int32, (WEIGHT_NUMEL, C_OUT), 0)
        k_col = lax.broadcasted_iota(jnp.int32, (WEIGHT_NUMEL, C_OUT), 1)
        osel_a = ((q_row & (C_OUT - 1)) == k_col).astype(jnp.float32) * ALPHA  # [WN, Cout]
        sums = jnp.dot(acc_ref[...], osel_a,
                       preferred_element_type=jnp.float32)             # [N, Cout]
        out = sums * invc_ref[...]               # scatter(reduce='mean'); empty rows -> 0
        out = out + node_res_ref[...]            # residual: F.pad(node_attr) (pre-padded)
        mean = jnp.mean(out, axis=0, keepdims=True)
        cen = out - mean
        var = jnp.mean(cen * cen, axis=0, keepdims=True)
        out_ref[...] = cen * lax.rsqrt(var + BN_EPS) * gamma_ref[...] + beta_ref[...]


def tensor_product_conv_layer(node_attr, edge_index, edge_attr, edge_sh, params,
                              *, edge_tile=None, compute_dtype=jnp.bfloat16):
    """Forward pass of TensorProductConvLayer (residual=True, batch_norm=True,
    reduce='mean', out_nodes=None).  edge_tile=None -> single grid step (fits
    the shipped synthetic size); pass an explicit tile for larger graphs.
    compute_dtype sets the MXU operand dtype (bf16 fast path / f32 faithful);
    accumulation, the scatter contraction and the epilogue are always f32."""
    n_nodes, c_in = node_attr.shape
    n_edges = edge_attr.shape[0]
    te = n_edges if edge_tile is None else edge_tile
    assert n_edges % te == 0, "edge count must be a multiple of edge_tile"
    cdt = compute_dtype

    edge_src = edge_index[0].astype(jnp.int32)
    edge_dst = edge_index[1].astype(jnp.int32)

    # Index/constant plumbing done once outside the kernel: O(E)+O(N) bytes.
    edge_idx = jnp.stack([edge_src, edge_dst], axis=1)                          # [E, 2]
    edge_feat = jnp.concatenate([edge_attr.astype(cdt), edge_sh.astype(cdt)],
                                axis=1)                                         # [E, F+Csh]
    counts = jnp.zeros((n_nodes,), jnp.float32).at[edge_src].add(1.0)
    inv_counts = (1.0 / jnp.maximum(counts, 1.0))[:, None]                      # [N, 1]
    node_res = jnp.pad(node_attr.astype(jnp.float32),
                       ((0, 0), (0, C_OUT - c_in)))                             # [N, Cout]

    inputs = (
        node_attr.astype(cdt),                     # gather operand
        node_res,                                  # residual (f32)
        edge_feat,                                 # packed edge_attr | edge_sh
        edge_idx,                                  # packed [src, dst] int32
        inv_counts,
        params["w1"].astype(cdt), params["b1"].reshape(1, -1).astype(jnp.float32),
        params["w2"].astype(cdt), params["b2"].reshape(1, -1).astype(jnp.float32),
        params["bn_gamma"].reshape(1, -1).astype(jnp.float32),
        params["bn_beta"].reshape(1, -1).astype(jnp.float32),
    )

    edge_map = lambda t: (t, 0)    # tiled along the edge axis
    full_map = lambda t: (0, 0)    # resident across all edge tiles

    in_specs = [
        pl.BlockSpec((n_nodes, c_in), full_map),                 # node (compute dtype)
        pl.BlockSpec((n_nodes, C_OUT), full_map),                # node_res (f32)
        pl.BlockSpec((te, N_EDGE_FEAT + C_SH), edge_map),        # packed edge features
        pl.BlockSpec((te, 2), edge_map),                         # packed edge indices
        pl.BlockSpec((n_nodes, 1), full_map),                    # inv_counts
        pl.BlockSpec((N_EDGE_FEAT, N_EDGE_FEAT), full_map),      # w1
        pl.BlockSpec((1, N_EDGE_FEAT), full_map),                # b1
        pl.BlockSpec((N_EDGE_FEAT, WEIGHT_NUMEL), full_map),     # w2
        pl.BlockSpec((1, WEIGHT_NUMEL), full_map),               # b2
        pl.BlockSpec((1, C_OUT), full_map),                      # bn gamma
        pl.BlockSpec((1, C_OUT), full_map),                      # bn beta
    ]

    call = pl.pallas_call(
        tpconv_kernel,
        grid=(n_edges // te,),
        in_specs=in_specs,
        out_specs=pl.BlockSpec((n_nodes, C_OUT), full_map),
        out_shape=jax.ShapeDtypeStruct((n_nodes, C_OUT), jnp.float32),
        scratch_shapes=[pltpu.VMEM((n_nodes, WEIGHT_NUMEL), jnp.float32)],  # lane-dense acc
        compiler_params=pltpu.CompilerParams(
            dimension_semantics=("arbitrary",)),                 # edge axis accumulates
    )
    return call(*inputs)


def reference_forward(node_attr, edge_index, edge_attr, edge_sh, params):
    """Pure-JAX f32 reference of the same forward pass (for validation)."""
    edge_src, edge_dst = edge_index[0], edge_index[1]
    x_dst = node_attr[edge_dst]
    h = jnp.maximum(edge_attr @ params["w1"] + params["b1"], 0.0)
    w = h @ params["w2"] + params["b2"]
    w3 = w.reshape(-1, C_IN, C_SH, C_OUT)
    tp = ALPHA * jnp.einsum("eijk,ei,ej->ek", w3, x_dst, edge_sh)
    n = node_attr.shape[0]
    sums = jnp.zeros((n, C_OUT)).at[edge_src].add(tp)
    counts = jnp.zeros((n,)).at[edge_src].add(1.0)
    out = sums / jnp.maximum(counts, 1.0)[:, None]
    out = out + jnp.pad(node_attr, ((0, 0), (0, C_OUT - C_IN)))
    mean = out.mean(0, keepdims=True)
    cen = out - mean
    var = (cen * cen).mean(0, keepdims=True)
    return cen * lax.rsqrt(var + BN_EPS) * params["bn_gamma"] + params["bn_beta"]


def init_params(key):
    k1, k2, k3, k4 = jax.random.split(key, 4)
    bound1 = 1.0 / (N_EDGE_FEAT ** 0.5)
    return {
        "w1": jax.random.uniform(k1, (N_EDGE_FEAT, N_EDGE_FEAT),
                                 jnp.float32, -bound1, bound1),
        "b1": jax.random.uniform(k2, (N_EDGE_FEAT,),
                                 jnp.float32, -bound1, bound1),
        "w2": jax.random.uniform(k3, (N_EDGE_FEAT, WEIGHT_NUMEL),
                                 jnp.float32, -bound1, bound1),
        "b2": jax.random.uniform(k4, (WEIGHT_NUMEL,),
                                 jnp.float32, -bound1, bound1),
        "bn_gamma": jnp.ones((C_OUT,), jnp.float32),
        "bn_beta": jnp.zeros((C_OUT,), jnp.float32),
    }


if __name__ == "__main__":
    key = jax.random.PRNGKey(0)
    kp, kn, ks, ke, ki1, ki2 = jax.random.split(key, 6)

    params = init_params(kp)
    node_attr = jax.random.normal(kn, (N_NODES, C_IN), jnp.float32)
    edge_sh = jax.random.normal(ks, (N_EDGES, C_SH), jnp.float32)
    edge_attr = jax.random.normal(ke, (N_EDGES, N_EDGE_FEAT), jnp.float32)
    edge_src = jax.random.randint(ki1, (N_EDGES,), 0, N_NODES)
    edge_dst = jax.random.randint(ki2, (N_EDGES,), 0, N_NODES)
    edge_index = jnp.stack([edge_src, edge_dst], axis=0)   # [2, E]

    ref = reference_forward(node_attr, edge_index, edge_attr, edge_sh, params)

    # f32 MXU operands, single grid step (shipped size): tight tolerance.
    out_f32 = tensor_product_conv_layer(node_attr, edge_index, edge_attr, edge_sh,
                                        params, compute_dtype=jnp.float32)
    # bf16 MXU operands (v6e/v7x fast path), f32 accumulation/epilogue.
    out_bf16 = tensor_product_conv_layer(node_attr, edge_index, edge_attr, edge_sh,
                                         params, compute_dtype=jnp.bfloat16)
    # Tiled multi-step path (accumulator across grid steps), f32: tight tolerance.
    out_tiled = tensor_product_conv_layer(node_attr, edge_index, edge_attr, edge_sh,
                                          params, edge_tile=16,
                                          compute_dtype=jnp.float32)
    out_f32, out_bf16, out_tiled = jax.block_until_ready((out_f32, out_bf16, out_tiled))

    assert out_f32.shape == (N_NODES, C_OUT)
    assert out_bf16.shape == (N_NODES, C_OUT)
    assert jnp.allclose(out_f32, ref, atol=2e-4, rtol=2e-4), "f32 mismatch vs reference"
    assert jnp.allclose(out_tiled, ref, atol=2e-4, rtol=2e-4), "tiled f32 mismatch vs reference"
    assert jnp.allclose(out_bf16, ref, atol=1e-1, rtol=1e-1), "bf16 mismatch vs reference"

    print("KERNEL_OK")
</pallas_src>

<mosaic_0001>
module attributes {stable_mosaic.version = 11 : i64} {
  func.func @tpconv_kernel(%arg0: i32, %arg1: memref<16x4xf32, #tpu.memory_space<vmem>>, %arg2: memref<16x8xf32, #tpu.memory_space<vmem>>, %arg3: memref<64x20xf32, #tpu.memory_space<vmem>>, %arg4: memref<64x2xi32, #tpu.memory_space<vmem>>, %arg5: memref<16x1xf32, #tpu.memory_space<vmem>>, %arg6: memref<16x16xf32, #tpu.memory_space<vmem>>, %arg7: memref<1x16xf32, #tpu.memory_space<vmem>>, %arg8: memref<16x128xf32, #tpu.memory_space<vmem>>, %arg9: memref<1x128xf32, #tpu.memory_space<vmem>>, %arg10: memref<1x8xf32, #tpu.memory_space<vmem>>, %arg11: memref<1x8xf32, #tpu.memory_space<vmem>>, %arg12: memref<16x8xf32, #tpu.memory_space<vmem>>, %arg13: memref<16x128xf32, #tpu.memory_space<vmem>>) attributes {dimension_semantics = [#tpu.dimension_semantics<arbitrary>], iteration_bounds = array<i64: 1>, scalar_prefetch = 0 : i64, scratch_operands = 1 : i64, tpu.core_type = #tpu.core_type<tc>, window_params = [{pipeline_mode = #tpu.pipeline_mode<synchronous>, transform_indices = @transform_0, window_bounds = array<i64: 16, 4>}, {pipeline_mode = #tpu.pipeline_mode<synchronous>, transform_indices = @transform_1, window_bounds = array<i64: 16, 8>}, {transform_indices = @transform_2, window_bounds = array<i64: 64, 20>}, {transform_indices = @transform_3, window_bounds = array<i64: 64, 2>}, {pipeline_mode = #tpu.pipeline_mode<synchronous>, transform_indices = @transform_4, window_bounds = array<i64: 16, 1>}, {pipeline_mode = #tpu.pipeline_mode<synchronous>, transform_indices = @transform_5, window_bounds = array<i64: 16, 16>}, {pipeline_mode = #tpu.pipeline_mode<synchronous>, transform_indices = @transform_6, window_bounds = array<i64: 1, 16>}, {pipeline_mode = #tpu.pipeline_mode<synchronous>, transform_indices = @transform_7, window_bounds = array<i64: 16, 128>}, {pipeline_mode = #tpu.pipeline_mode<synchronous>, transform_indices = @transform_8, window_bounds = array<i64: 1, 128>}, {pipeline_mode = #tpu.pipeline_mode<synchronous>, transform_indices = @transform_9, window_bounds = array<i64: 1, 8>}, {pipeline_mode = #tpu.pipeline_mode<synchronous>, transform_indices = @transform_10, window_bounds = array<i64: 1, 8>}, {pipeline_mode = #tpu.pipeline_mode<synchronous>, transform_indices = @transform_11, window_bounds = array<i64: 16, 8>}]} {
    %c0_i32 = arith.constant 0 : i32
    %0 = arith.cmpi eq, %arg0, %c0_i32 : i32
    %1 = arith.extui %0 : i1 to i32
    %c0_i32_0 = arith.constant 0 : i32
    %2 = arith.cmpi ne, %1, %c0_i32_0 : i32
    scf.if %2 {
      %cst_28 = arith.constant 0.000000e+00 : f32
      %65 = vector.broadcast %cst_28 : f32 to vector<16x128xf32>
      %c0_29 = arith.constant 0 : index
      %c0_30 = arith.constant 0 : index
      %66 = vector.load %arg13[%c0_29, %c0_30] : memref<16x128xf32, #tpu.memory_space<vmem>>, vector<16x128xf32>
      tpu.vector_store %arg13[%c0_29, %c0_30], %65 {strides = array<i32>} : memref<16x128xf32, #tpu.memory_space<vmem>>, vector<16x128xf32>,
    } else {
    }
    %c0 = arith.constant 0 : index
    %c0_1 = arith.constant 0 : index
    %3 = vector.load %arg1[%c0, %c0_1] : memref<16x4xf32, #tpu.memory_space<vmem>>, vector<16x4xf32>
    %c0_2 = arith.constant 0 : index
    %c0_3 = arith.constant 0 : index
    %4 = vector.load %arg3[%c0_2, %c0_3] : memref<64x20xf32, #tpu.memory_space<vmem>>, vector<64x20xf32>
    %5 = vector.extract_strided_slice %4 {offsets = [0, 0], sizes = [64, 16], strides = [1, 1]} : vector<64x20xf32> to vector<64x16xf32>
    %6 = vector.extract_strided_slice %4 {offsets = [0, 16], sizes = [64, 4], strides = [1, 1]} : vector<64x20xf32> to vector<64x4xf32>
    %c0_4 = arith.constant 0 : index
    %c0_5 = arith.constant 0 : index
    %7 = vector.load %arg4[%c0_4, %c0_5] : memref<64x2xi32, #tpu.memory_space<vmem>>, vector<64x2xi32>
    %8 = vector.extract_strided_slice %7 {offsets = [0, 0], sizes = [64, 1], strides = [1, 1]} : vector<64x2xi32> to vector<64x1xi32>
    %9 = vector.extract_strided_slice %7 {offsets = [0, 1], sizes = [64, 1], strides = [1, 1]} : vector<64x2xi32> to vector<64x1xi32>
    %10 = tpu.iota {dimensions = array<i32: 1>} : vector<64x16xi32>
    %11 = vector.broadcast %9 : vector<64x1xi32> to vector<64x16xi32>
    %12 = arith.cmpi eq, %11, %10 : vector<64x16xi32>
    %13 = arith.extui %12 : vector<64x16xi1> to vector<64x16xi32>
    %14 = arith.sitofp %13 : vector<64x16xi32> to vector<64x16xf32>
    %15 = vector.broadcast %8 : vector<64x1xi32> to vector<64x16xi32>
    %16 = arith.cmpi eq, %15, %10 : vector<64x16xi32>
    %17 = arith.extui %16 : vector<64x16xi1> to vector<64x16xi32>
    %18 = arith.sitofp %17 : vector<64x16xi32> to vector<64x16xf32>
    %cst = arith.constant dense<0.000000e+00> : vector<64x4xf32>
    %19 = tpu.matmul %14, %3, %cst {dimension_numbers = #tpu.dot_dimension_numbers<[1], [0], [0], [1], [0, 0, 1, 1], [], []>} : vector<64x16xf32>, vector<16x4xf32>, vector<64x4xf32> -> vector<64x4xf32>
    %c0_6 = arith.constant 0 : index
    %c0_7 = arith.constant 0 : index
    %20 = vector.load %arg6[%c0_6, %c0_7] : memref<16x16xf32, #tpu.memory_space<vmem>>, vector<16x16xf32>
    %cst_8 = arith.constant dense<0.000000e+00> : vector<64x16xf32>
    %21 = tpu.matmul %5, %20, %cst_8 {dimension_numbers = #tpu.dot_dimension_numbers<[1], [0], [0], [1], [0, 0, 1, 1], [], []>} : vector<64x16xf32>, vector<16x16xf32>, vector<64x16xf32> -> vector<64x16xf32>
    %c0_9 = arith.constant 0 : index
    %c0_10 = arith.constant 0 : index
    %22 = vector.load %arg7[%c0_9, %c0_10] : memref<1x16xf32, #tpu.memory_space<vmem>>, vector<1x16xf32>
    %23 = vector.broadcast %22 : vector<1x16xf32> to vector<64x16xf32>
    %24 = arith.addf %21, %23 : vector<64x16xf32>
    %cst_11 = arith.constant 0.000000e+00 : f32
    %25 = vector.broadcast %cst_11 : f32 to vector<64x16xf32>
    %26 = arith.maximumf %24, %25 : vector<64x16xf32>
    %c0_12 = arith.constant 0 : index
    %c0_13 = arith.constant 0 : index
    %27 = vector.load %arg8[%c0_12, %c0_13] : memref<16x128xf32, #tpu.memory_space<vmem>>, vector<16x128xf32>
    %cst_14 = arith.constant dense<0.000000e+00> : vector<64x128xf32>
    %28 = tpu.matmul %26, %27, %cst_14 {dimension_numbers = #tpu.dot_dimension_numbers<[1], [0], [0], [1], [0, 0, 1, 1], [], []>} : vector<64x16xf32>, vector<16x128xf32>, vector<64x128xf32> -> vector<64x128xf32>
    %c0_15 = arith.constant 0 : index
    %c0_16 = arith.constant 0 : index
    %29 = vector.load %arg9[%c0_15, %c0_16] : memref<1x128xf32, #tpu.memory_space<vmem>>, vector<1x128xf32>
    %30 = vector.broadcast %29 : vector<1x128xf32> to vector<64x128xf32>
    %31 = arith.addf %28, %30 : vector<64x128xf32>
    %32 = tpu.iota {dimensions = array<i32: 1>} : vector<4x16xi32>
    %33 = tpu.iota {dimensions = array<i32: 0>} : vector<4x16xi32>
    %c2_i32 = arith.constant 2 : i32
    %34 = vector.broadcast %c2_i32 : i32 to vector<4x16xi32>
    %35 = arith.shrsi %32, %34 : vector<4x16xi32>
    %36 = arith.cmpi eq, %35, %33 : vector<4x16xi32>
    %37 = arith.extui %36 : vector<4x16xi1> to vector<4x16xi32>
    %38 = arith.sitofp %37 : vector<4x16xi32> to vector<4x16xf32>
    %39 = tpu.iota {dimensions = array<i32: 1>} : vector<4x16xi32>
    %40 = tpu.iota {dimensions = array<i32: 0>} : vector<4x16xi32>
    %c3_i32 = arith.constant 3 : i32
    %41 = vector.broadcast %c3_i32 : i32 to vector<4x16xi32>
    %42 = arith.andi %39, %41 : vector<4x16xi32>
    %43 = arith.cmpi eq, %42, %40 : vector<4x16xi32>
    %44 = arith.extui %43 : vector<4x16xi1> to vector<4x16xi32>
    %45 = arith.sitofp %44 : vector<4x16xi32> to vector<4x16xf32>
    %46 = tpu.iota {dimensions = array<i32: 1>} : vector<16x128xi32>
    %47 = tpu.iota {dimensions = array<i32: 0>} : vector<16x128xi32>
    %c3_i32_17 = arith.constant 3 : i32
    %48 = vector.broadcast %c3_i32_17 : i32 to vector<16x128xi32>
    %49 = arith.shrsi %46, %48 : vector<16x128xi32>
    %50 = arith.cmpi eq, %49, %47 : vector<16x128xi32>
    %51 = arith.extui %50 : vector<16x128xi1> to vector<16x128xi32>
    %52 = arith.sitofp %51 : vector<16x128xi32> to vector<16x128xf32>
    %cst_18 = arith.constant dense<0.000000e+00> : vector<64x16xf32>
    %53 = tpu.matmul %19, %38, %cst_18 {dimension_numbers = #tpu.dot_dimension_numbers<[1], [0], [0], [1], [0, 0, 1, 1], [], []>} : vector<64x4xf32>, vector<4x16xf32>, vector<64x16xf32> -> vector<64x16xf32>
    %cst_19 = arith.constant dense<0.000000e+00> : vector<64x16xf32>
    %54 = tpu.matmul %6, %45, %cst_19 {dimension_numbers = #tpu.dot_dimension_numbers<[1], [0], [0], [1], [0, 0, 1, 1], [], []>} : vector<64x4xf32>, vector<4x16xf32>, vector<64x16xf32> -> vector<64x16xf32>
    %55 = arith.mulf %53, %54 : vector<64x16xf32>
    %cst_20 = arith.constant dense<0.000000e+00> : vector<64x128xf32>
    %56 = tpu.matmul %55, %52, %cst_20 {dimension_numbers = #tpu.dot_dimension_numbers<[1], [0], [0], [1], [0, 0, 1, 1], [], []>} : vector<64x16xf32>, vector<16x128xf32>, vector<64x128xf32> -> vector<64x128xf32>
    %57 = arith.mulf %31, %56 : vector<64x128xf32>
    %c0_21 = arith.constant 0 : index
    %c0_22 = arith.constant 0 : index
    %58 = vector.load %arg13[%c0_21, %c0_22] : memref<16x128xf32, #tpu.memory_space<vmem>>, vector<16x128xf32>
    %cst_23 = arith.constant dense<0.000000e+00> : vector<16x128xf32>
    %59 = tpu.matmul %18, %57, %cst_23 {dimension_numbers = #tpu.dot_dimension_numbers<[0], [0], [1], [1], [0, 1, 1, 1], [], []>} : vector<64x16xf32>, vector<64x128xf32>, vector<16x128xf32> -> vector<16x128xf32>
    %60 = arith.addf %58, %59 : vector<16x128xf32>
    %c0_24 = arith.constant 0 : index
    %c0_25 = arith.constant 0 : index
    %61 = vector.load %arg13[%c0_24, %c0_25] : memref<16x128xf32, #tpu.memory_space<vmem>>, vector<16x128xf32>
    tpu.vector_store %arg13[%c0_24, %c0_25], %60 {strides = array<i32>} : memref<16x128xf32, #tpu.memory_space<vmem>>, vector<16x128xf32>,
    %c0_i32_26 = arith.constant 0 : i32
    %62 = arith.cmpi eq, %arg0, %c0_i32_26 : i32
    %63 = arith.extui %62 : i1 to i32
    %c0_i32_27 = arith.constant 0 : i32
    %64 = arith.cmpi ne, %63, %c0_i32_27 : i32
    scf.if %64 {
      %65 = tpu.iota {dimensions = array<i32: 0>} : vector<128x8xi32>
      %66 = tpu.iota {dimensions = array<i32: 1>} : vector<128x8xi32>
      %c7_i32 = arith.constant 7 : i32
      %67 = vector.broadcast %c7_i32 : i32 to vector<128x8xi32>
      %68 = arith.andi %65, %67 : vector<128x8xi32>
      %69 = arith.cmpi eq, %68, %66 : vector<128x8xi32>
      %70 = arith.extui %69 : vector<128x8xi1> to vector<128x8xi32>
      %71 = arith.sitofp %70 : vector<128x8xi32> to vector<128x8xf32>
      %cst_28 = arith.constant 2.500000e-01 : f32
      %72 = vector.broadcast %cst_28 : f32 to vector<128x8xf32>
      %73 = arith.mulf %71, %72 : vector<128x8xf32>
      %c0_29 = arith.constant 0 : index
      %c0_30 = arith.constant 0 : index
      %74 = vector.load %arg13[%c0_29, %c0_30] : memref<16x128xf32, #tpu.memory_space<vmem>>, vector<16x128xf32>
      %cst_31 = arith.constant dense<0.000000e+00> : vector<16x8xf32>
      %75 = tpu.matmul %74, %73, %cst_31 {dimension_numbers = #tpu.dot_dimension_numbers<[1], [0], [0], [1], [0, 0, 1, 1], [], []>} : vector<16x128xf32>, vector<128x8xf32>, vector<16x8xf32> -> vector<16x8xf32>
      %c0_32 = arith.constant 0 : index
      %c0_33 = arith.constant 0 : index
      %76 = vector.load %arg5[%c0_32, %c0_33] : memref<16x1xf32, #tpu.memory_space<vmem>>, vector<16x1xf32>
      %77 = vector.broadcast %76 : vector<16x1xf32> to vector<16x8xf32>
      %78 = arith.mulf %75, %77 : vector<16x8xf32>
      %c0_34 = arith.constant 0 : index
      %c0_35 = arith.constant 0 : index
      %79 = vector.load %arg2[%c0_34, %c0_35] : memref<16x8xf32, #tpu.memory_space<vmem>>, vector<16x8xf32>
      %80 = arith.addf %78, %79 : vector<16x8xf32>
      %cst_36 = arith.constant dense<0.000000e+00> : vector<8xf32>
      %81 = vector.multi_reduction <add>, %80, %cst_36 [0] : vector<16x8xf32> to vector<8xf32>
      %82 = vector.shape_cast %81 : vector<8xf32> to vector<1x8xf32>
      %cst_37 = arith.constant 1.600000e+01 : f32
      %83 = vector.broadcast %cst_37 : f32 to vector<1x8xf32>
      %84 = arith.divf %82, %83 : vector<1x8xf32>
      %85 = vector.broadcast %84 : vector<1x8xf32> to vector<16x8xf32>
      %86 = arith.subf %80, %85 : vector<16x8xf32>
      %87 = arith.mulf %86, %86 : vector<16x8xf32>
      %cst_38 = arith.constant dense<0.000000e+00> : vector<8xf32>
      %88 = vector.multi_reduction <add>, %87, %cst_38 [0] : vector<16x8xf32> to vector<8xf32>
      %89 = vector.shape_cast %88 : vector<8xf32> to vector<1x8xf32>
      %cst_39 = arith.constant 1.600000e+01 : f32
      %90 = vector.broadcast %cst_39 : f32 to vector<1x8xf32>
      %91 = arith.divf %89, %90 : vector<1x8xf32>
      %cst_40 = arith.constant 9.99999974E-6 : f32
      %92 = vector.broadcast %cst_40 : f32 to vector<1x8xf32>
      %93 = arith.addf %91, %92 : vector<1x8xf32>
      %94 = math.rsqrt %93 : vector<1x8xf32>
      %95 = vector.broadcast %94 : vector<1x8xf32> to vector<16x8xf32>
      %96 = arith.mulf %86, %95 : vector<16x8xf32>
      %c0_41 = arith.constant 0 : index
      %c0_42 = arith.constant 0 : index
      %97 = vector.load %arg10[%c0_41, %c0_42] : memref<1x8xf32, #tpu.memory_space<vmem>>, vector<1x8xf32>
      %98 = vector.broadcast %97 : vector<1x8xf32> to vector<16x8xf32>
      %99 = arith.mulf %96, %98 : vector<16x8xf32>
      %c0_43 = arith.constant 0 : index
      %c0_44 = arith.constant 0 : index
      %100 = vector.load %arg11[%c0_43, %c0_44] : memref<1x8xf32, #tpu.memory_space<vmem>>, vector<1x8xf32>
      %101 = vector.broadcast %100 : vector<1x8xf32> to vector<16x8xf32>
      %102 = arith.addf %99, %101 : vector<16x8xf32>
      %c0_45 = arith.constant 0 : index
      %c0_46 = arith.constant 0 : index
      %103 = vector.load %arg12[%c0_45, %c0_46] : memref<16x8xf32, #tpu.memory_space<vmem>>, vector<16x8xf32>
      tpu.vector_store %arg12[%c0_45, %c0_46], %102 {strides = array<i32>} : memref<16x8xf32, #tpu.memory_space<vmem>>, vector<16x8xf32>,
    } else {
    }
    return
  }
  func.func @transform_0(%arg0: i32) -> (i32, i32) {
    %c0_i32 = arith.constant 0 : i32
    %c0_i32_0 = arith.constant 0 : i32
    %c0_i32_1 = arith.constant 0 : i32
    return %c0_i32, %c0_i32_0 : i32, i32
  }
  func.func @transform_1(%arg0: i32) -> (i32, i32) {
    %c0_i32 = arith.constant 0 : i32
    %c0_i32_0 = arith.constant 0 : i32
    %c0_i32_1 = arith.constant 0 : i32
    return %c0_i32, %c0_i32_0 : i32, i32
  }
  func.func @transform_2(%arg0: i32) -> (i32, i32) {
    %c0_i32 = arith.constant 0 : i32
    %c0_i32_0 = arith.constant 0 : i32
    return %arg0, %c0_i32 : i32, i32
  }
  func.func @transform_3(%arg0: i32) -> (i32, i32) {
    %c0_i32 = arith.constant 0 : i32
    %c0_i32_0 = arith.constant 0 : i32
    return %arg0, %c0_i32 : i32, i32
  }
  func.func @transform_4(%arg0: i32) -> (i32, i32) {
    %c0_i32 = arith.constant 0 : i32
    %c0_i32_0 = arith.constant 0 : i32
    %c0_i32_1 = arith.constant 0 : i32
    return %c0_i32, %c0_i32_0 : i32, i32
  }
  func.func @transform_5(%arg0: i32) -> (i32, i32) {
    %c0_i32 = arith.constant 0 : i32
    %c0_i32_0 = arith.constant 0 : i32
    %c0_i32_1 = arith.constant 0 : i32
    return %c0_i32, %c0_i32_0 : i32, i32
  }
  func.func @transform_6(%arg0: i32) -> (i32, i32) {
    %c0_i32 = arith.constant 0 : i32
    %c0_i32_0 = arith.constant 0 : i32
    %c0_i32_1 = arith.constant 0 : i32
    return %c0_i32, %c0_i32_0 : i32, i32
  }
  func.func @transform_7(%arg0: i32) -> (i32, i32) {
    %c0_i32 = arith.constant 0 : i32
    %c0_i32_0 = arith.constant 0 : i32
    %c0_i32_1 = arith.constant 0 : i32
    return %c0_i32, %c0_i32_0 : i32, i32
  }
  func.func @transform_8(%arg0: i32) -> (i32, i32) {
    %c0_i32 = arith.constant 0 : i32
    %c0_i32_0 = arith.constant 0 : i32
    %c0_i32_1 = arith.constant 0 : i32
    return %c0_i32, %c0_i32_0 : i32, i32
  }
  func.func @transform_9(%arg0: i32) -> (i32, i32) {
    %c0_i32 = arith.constant 0 : i32
    %c0_i32_0 = arith.constant 0 : i32
    %c0_i32_1 = arith.constant 0 : i32
    return %c0_i32, %c0_i32_0 : i32, i32
  }
  func.func @transform_10(%arg0: i32) -> (i32, i32) {
    %c0_i32 = arith.constant 0 : i32
    %c0_i32_0 = arith.constant 0 : i32
    %c0_i32_1 = arith.constant 0 : i32
    return %c0_i32, %c0_i32_0 : i32, i32
  }
  func.func @transform_11(%arg0: i32) -> (i32, i32) {
    %c0_i32 = arith.constant 0 : i32
    %c0_i32_0 = arith.constant 0 : i32
    %c0_i32_1 = arith.constant 0 : i32
    return %c0_i32, %c0_i32_0 : i32, i32
  }
}

</mosaic_0001>

<bundles_post_ra>
// kernel: tpu_custom_call.1
= control target key start
LH: loop header
LB: loop body
LE: loop exit
PB: predicated region body
PF: predicated region fallthrough
CT: control target
= control target key end

     0   :  { %v1004_v0 = vmov 1   ;;  %v62_v12 = vlaneseq  ;;  %vm160_vm1 = vcmask 130048   ;;  %v1005_v15 = vmov 0.0   ;;  %s1006_s22 = smov 112   ;;  %s1448_s3 = inlined_call_operand.vmem [shape: s32[64,2], index: 3, kind: input, shape index: {}]   ;;  %s1449_s0 = inlined_call_operand.vmem [shape: f32[16,4], index: 0, kind: input, shape index: {}]   ;;  %s1450_s2 = inlined_call_operand.vmem [shape: f32[64,20], index: 2, kind: input, shape index: {}]   ;;  %s1451_s5 = inlined_call_operand.vmem [shape: f32[16,16], index: 5, kind: input, shape index: {}]   ;;  %s1452_s6 = inlined_call_operand.vmem [shape: f32[1,16], index: 6, kind: input, shape index: {}]   ;;  %s1453_s4 = inlined_call_operand.vmem [shape: f32[16,1], index: 4, kind: input, shape index: {}]   ;;  %s1454_s8 = inlined_call_operand.vmem [shape: f32[1,128], index: 8, kind: input, shape index: {}]   ;;  %s1455_s7 = inlined_call_operand.vmem [shape: f32[16,128], index: 7, kind: input, shape index: {}]   ;;  %s1456_s9 = inlined_call_operand.vmem [shape: f32[1,8], index: 9, kind: input, shape index: {}]   ;;  %s1457_s10 = inlined_call_operand.vmem [shape: f32[1,8], index: 10, kind: input, shape index: {}]   ;;  %s1458_s1 = inlined_call_operand.vmem [shape: f32[16,8], index: 1, kind: input, shape index: {}]   ;;  %s1459_s11 = inlined_call_operand.vmem [shape: f32[16,8], index: 11, kind: output, shape index: {}]  }
   0x1   :  { %991 = vset.pattern.permute.xlu1 %v1004_v0  ;;  %990 = vset.pattern.permute.xlu0 %v1004_v0  ;;  %v1073_v1 = vld [vmem:[%s1448_s3 + $0x10] sm:$0xff]  ;;  %v1078_v2 = vld [vmem:[%s1448_s3] sm:$0xff]  ;;  %v1091_v4 = vld [vmem:[%s1448_s3 + $0x18] sm:$0xff]  ;;  %vm419_vm10 = vcmask 1043456   ;;  %vm394_vm11 = vcmask 31744   ;;  %v1007_v51 = vmov 0  }
   0x2   :  { %71 = vperm.xlu1 %991, %v1073_v1   ;;  %65 = vperm.xlu0 %990, %v1078_v2   ;;  %v1085_v3 = vld [vmem:[%s1448_s3 + $0x20] sm:$0xff]  ;;  %v1096_v5 = vld [vmem:[%s1448_s3 + $0x8] sm:$0xff]  ;;  %v1109_v7 = vld [vmem:[%s1448_s3 + $0x38] sm:$0xff]  ;;  %v1124_v13 = vand.u32 127, %v62_v12  ;;  %v1189_v36 = vshrl.u32 %v62_v12, 7 }
   0x3   :  { %992 = vset.pattern.permute.xlu2 %v1004_v0  ;;  %v1101_v6 = vld [vmem:[%s1448_s3 + $0x28] sm:$0xff]  ;;  %v1114_v8 = vld [vmem:[%s1448_s3 + $0x30] sm:$0xff]  ;;  %v44_v10 = vld [vmem:[%s1449_s0] sm:$0xff] }
   0x4   :  { %77 = vperm.xlu2 %992, %v1085_v3   ;;  %v45_v9 = vld [vmem:[%s1449_s0 + $0x8] sm:$0xff]  ;;  %v1140_v21 = vld [vmem:[%s1450_s2 + $0x10] sm:$0xff]  ;;  %v46_v22 = vld [vmem:[%s1450_s2] sm:$0xff]  ;;  %v378_v37 = vshra.s32 %v1124_v13, 2  ;;  %v382_v44 = vand.u32 3, %v1124_v13  ;;  %v1280_v12 = vadd.s32 8, %v1189_v36 }
   0x5   :  { %199 = vmatpush.msra.mxu0 %v45_v9  ;;  %982 = vmatpush.msra.mxu1 %v45_v9  ;;  %v1135_v20 = vld [vmem:[%s1450_s2 + $0x8] sm:$0xff]  ;;  %v1154_v24 = vld [vmem:[%s1450_s2 + $0x20] sm:$0xff]  ;;  %v1165_v28 = vld [vmem:[%s1450_s2 + $0x18] sm:$0xff] }
   0x6   :  { %v1159_v25 = vld [vmem:[%s1450_s2 + $0x28] sm:$0xff]  ;;  %vm379_vm9 = vcmp.eq.s32.totalorder %v378_v37, %v1189_v36  ;;  %v53_v39 = vld [vmem:[%s1450_s2 + $0x38] sm:$0xff]  ;;  %v52_v40 = vld [vmem:[%s1450_s2 + $0x30] sm:$0xff]  ;;  %vm383_vm12 = vcmp.eq.s32.totalorder %v382_v44, %v1189_v36 }
   0x7   :  { %200 = vmatpush.msra.mxu0 %v44_v10  ;;  %983 = vmatpush.msra.mxu1 %v44_v10  ;;  %v932_v38 = vsel %vm379_vm9, 1.0, %v1005_v15  ;;  %v933_v45 = vsel %vm383_vm12, 1.0, %v1005_v15  ;;  %v227_v47 = vld [vmem:[%s1451_s5 + $0x8] sm:$0xff]  ;;  %v226_v48 = vld [vmem:[%s1451_s5] sm:$0xff] }
   0x8   :  { %936 = vmatpush.msk.msra.mxu3 %vm419_vm10, %v932_v38  ;;  %v812_v59 = vld [vmem:[%s1453_s4 + $0x8] sm:$0xff]  ;;  %v811_v62 = vld [vmem:[%s1453_s4] sm:$0xff] }
   0x9   :  { %270 = vmatpush.msrb.mxu1 %v227_v47 }
   0xa   :  { %74 = vperm.xlu1 %991, %v1091_v4   ;;  %68 = vperm.xlu0 %990, %v1096_v5  }
   0xb   :  { %945 = vmatpush.msk.msrb.mxu3 %vm419_vm10, %v933_v45  ;;  %271 = vmatpush.msrb.mxu1 %v226_v48 }
   0xc   :  { %80 = vperm.xlu2 %992, %v1101_v6  }
  0x12   :  { %86 = vperm.xlu1 %991, %v1109_v7   ;;  %83 = vperm.xlu0 %990, %v1114_v8  }
  0x14   :  { %464 = vrot.lane.b32.xlu2 %v46_v22, %s1006_s22 }
  0x15   :  { %994 = vset.pattern.permute.xlu2 %v1007_v51 }
  0x1a   :  { %466 = vrot.lane.b32.xlu0 %v1135_v20, %s1006_s22  ;;  %468 = vrot.lane.b32.xlu1 %v1140_v21, %s1006_s22 }
  0x1b   :  { %993 = vset.pattern.permute.xlu1 %v1007_v51  ;;  %995 = vset.pattern.permute.xlu0 %v1007_v51 }
  0x1c   :  { %470 = vrot.lane.b32.xlu2 %v1165_v28, %s1006_s22 }
  0x22   :  { %472 = vrot.lane.b32.xlu0 %v1154_v24, %s1006_s22  ;;  %474 = vrot.lane.b32.xlu1 %v1159_v25, %s1006_s22 }
  0x24   :  { %476 = vrot.lane.b32.xlu2 %v52_v40, %s1006_s22 }
  0x2a   :  { %478 = vrot.lane.b32.xlu0 %v53_v39, %s1006_s22  ;;  %113 = vperm.xlu1 %993, %v1078_v2  }
  0x2c   :  { %116 = vperm.xlu2 %994, %v1096_v5  }
  0x32   :  { %119 = vperm.xlu0 %995, %v1073_v1   ;;  %122 = vperm.xlu1 %993, %v1091_v4   ;;  %v1268_v4 = vld [vmem:[%s1452_s6] ss:$0 sm:$0xff] }
  0x34   :  { %125 = vperm.xlu2 %994, %v1085_v3   ;;  %v306_v3 = vld [vmem:[%s1455_s7 + $0x8] sm:$0xff] }
  0x35   :  { %349 = vmatpush.msra.mxu2 %v306_v3 }
  0x3a   :  { %134 = vperm.xlu0 %995, %v1109_v7   ;;  %128 = vperm.xlu1 %993, %v1101_v6  }
  0x3c   :  { %131 = vperm.xlu2 %994, %v1114_v8   ;;  %v305_v8 = vld [vmem:[%s1455_s7] sm:$0xff] }
  0x3d   :  { %350 = vmatpush.msra.mxu2 %v305_v8 }
  0x42   :  { %820 = vperm.xlu0 %995, %v812_v59  }
  0x44   :  { %815 = vperm.xlu2 %994, %v811_v62  }
  0x5e   :  { %v78_v11 = vpop.permute.xlu2 %77 }
  0x5f   :  { %vm92_vm8 = vcmp.eq.s32.totalorder %v78_v11, %v1124_v13 }
  0x60   :  { %v896_v35 = vsel %vm92_vm8, 1.0, %v1005_v15 }
  0x66   :  { %v81_v14 = vpop.permute.xlu2 %80 }
  0x67   :  { %vm93_vm0 = vcmp.eq.s32.totalorder %v81_v14, %v1124_v13  ;;  %v387_v14 = vshra.s32 %v1124_v13, 3 }
  0x68   :  { %v897_v16 = vsel %vm93_vm0, 1.0, %v1005_v15 }
  0x69   :  { %913 = vmatmul.msk.f32.vlgmr.msra.gmra.mxu1 %vm160_vm1, %v897_v16  ;;  %vm389_vm14 = vcmp.eq.s32.totalorder %v387_v14, %v1280_v12  ;;  %vm388_vm15 = vcmp.eq.s32.totalorder %v387_v14, %v1189_v36 }
  0x6e   :  { %v465_v54 = vpop.permute.xlu2 %464 }
  0x74   :  { %v72_v17 = vpop.permute.xlu1 %71  ;;  %v66_v18 = vpop.permute.xlu0 %65 }
  0x75   :  { %vm88_vm2 = vcmp.eq.s32.totalorder %v66_v18, %v1124_v13  ;;  %vm90_vm4 = vcmp.eq.s32.totalorder %v72_v17, %v1124_v13 }
  0x76   :  { %v892_v19 = vsel %vm88_vm2, 1.0, %v1005_v15  ;;  %v894_v29 = vsel %vm90_vm4, 1.0, %v1005_v15  ;;  %v471_v57 = vpop.permute.xlu2 %470 }
  0x77   :  { %908 = vmatmul.msk.f32.vlgmr.msra.gmra.mxu0 %vm160_vm1, %v892_v19  ;;  %v1008_v19 = vmov 1.0  }
  0x78   :  { %954 = vmatpush.msk.msrb.mxu0 %vm389_vm14, %v1008_v19 }
  0x7a   :  { %955 = vmatpush.msk.msrb.mxu0 %vm388_vm15, %v1008_v19 }
  0x7c   :  { %v69_v23 = vpop.permute.xlu0 %68  ;;  %v75_v26 = vpop.permute.xlu1 %74 }
  0x7d   :  { %vm89_vm3 = vcmp.eq.s32.totalorder %v69_v23, %v1124_v13  ;;  %vm91_vm6 = vcmp.eq.s32.totalorder %v75_v26, %v1124_v13 }
  0x7e   :  { %v893_v27 = vsel %vm89_vm3, 1.0, %v1005_v15  ;;  %v895_v33 = vsel %vm91_vm6, 1.0, %v1005_v15  ;;  %v477_v61 = vpop.permute.xlu2 %476 }
  0x7f   :  { %909 = vmatmul.msk.f32.gmra.mxu0 %vm160_vm1, %v893_v27 }
  0x84   :  { %v84_v30 = vpop.permute.xlu0 %83  ;;  %v87_v32 = vpop.permute.xlu1 %86 }
  0x85   :  { %vm94_vm5 = vcmp.eq.s32.totalorder %v84_v30, %v1124_v13  ;;  %vm95_vm7 = vcmp.eq.s32.totalorder %v87_v32, %v1124_v13 }
  0x86   :  { %v898_v31 = vsel %vm94_vm5, 1.0, %v1005_v15  ;;  %v899_v34 = vsel %vm95_vm7, 1.0, %v1005_v15 }
  0x87   :  { %910 = vmatmul.msk.f32.gmra.mxu0 %vm160_vm1, %v894_v29  ;;  %914 = vmatmul.msk.f32.gmra.mxu1 %vm160_vm1, %v898_v31 }
  0x8c   :  { %v467_v55 = vpop.permute.xlu0 %466  ;;  %v469_v56 = vpop.permute.xlu1 %468 }
  0x8f   :  { %911 = vmatmul.msk.f32.gmra.mxu0 %vm160_vm1, %v895_v33  ;;  %915 = vmatmul.msk.f32.gmra.mxu1 %vm160_vm1, %v899_v34 }
  0x94   :  { %v473_v58 = vpop.permute.xlu0 %472  ;;  %v475_v60 = vpop.permute.xlu1 %474 }
  0x97   :  { %912 = vmatmul.msk.f32.gmra.mxu0 %vm160_vm1, %v896_v35  ;;  %916 = vmatmul.msk.f32.vlgmr.msrb.gmra.mxu1 %vm160_vm1, %v46_v22 }
  0x9c   :  { %v479_v63 = vpop.permute.xlu0 %478  ;;  %v114_v10 = vpop.permute.xlu1 %113 }
  0x9d   :  { %vm136_vm13 = vcmp.eq.s32.totalorder %v114_v10, %v1124_v13 }
  0x9e   :  { %v900_v11 = vsel %vm136_vm13, 1.0, %v1005_v15 }
  0x9f   :  { %917 = vmatmul.msk.f32.gmra.mxu1 %vm160_vm1, %v1135_v20  ;;  %623 = vxpose.xlu1.b32.start [1/8] (short) (narrow) %v900_v11, 16  ;;  %v1336_v11 = vld [vmem:[%s1454_s8] ss:$0 sm:$0xff] }
  0xa4   :  { %v120_v27 = vpop.permute.xlu0 %119  ;;  %v123_v33 = vpop.permute.xlu1 %122 }
  0xa5   :  { %vm138_vm2 = vcmp.eq.s32.totalorder %v120_v27, %v1124_v13  ;;  %vm139_vm3 = vcmp.eq.s32.totalorder %v123_v33, %v1124_v13  ;;  %v702_v33 = vadd.s32 96, %v1189_v36 }
  0xa6   :  { %v903_v34 = vsel %vm139_vm3, 1.0, %v1005_v15 }
  0xa7   :  { %918 = vmatmul.msk.f32.gmra.mxu1 %vm160_vm1, %v1140_v21  ;;  %v117_v21 = vpop.permute.xlu2 %116 }
  0xa8   :  { %vm137_vm0 = vcmp.eq.s32.totalorder %v117_v21, %v1124_v13 }
  0xa9   :  { %v901_v22 = vsel %vm137_vm0, 1.0, %v1005_v15 }
  0xaa   :  { %624 = vxpose.xlu1.b32.cont [2/8] (short) (narrow) %v901_v22, 16 }
  0xac   :  { %v129_v47 = vpop.permute.xlu1 %128 }
  0xad   :  { %vm141_vm5 = vcmp.eq.s32.totalorder %v129_v47, %v1124_v13 }
  0xae   :  { %v905_v48 = vsel %vm141_vm5, 1.0, %v1005_v15 }
  0xaf   :  { %919 = vmatmul.msk.f32.gmra.mxu1 %vm160_vm1, %v1165_v28  ;;  %v902_v28 = vsel %vm138_vm2, 1.0, %v1005_v15 }
  0xb2   :  { %625 = vxpose.xlu1.b32.cont [3/8] (short) (narrow) %v902_v28, 16 }
  0xb7   :  { %920 = vmatmul.msk.f32.gmra.mxu1 %vm160_vm1, %v1154_v24 }
  0xba   :  { %626 = vxpose.xlu1.b32.cont [4/8] (short) (narrow) %v903_v34, 16  ;;  %v701_v34 = vadd.s32 88, %v1189_v36 }
  0xbf   :  { %921 = vmatmul.msk.f32.gmra.mxu1 %vm160_vm1, %v1159_v25 }
  0xc7   :  { %922 = vmatmul.msk.f32.gmra.mxu1 %vm160_vm1, %v52_v40  ;;  %v126_v40 = vpop.permute.xlu2 %125 }
  0xc8   :  { %vm140_vm4 = vcmp.eq.s32.totalorder %v126_v40, %v1124_v13 }
  0xcf   :  { %923 = vmatmul.msk.f32.gmra.mxu1 %vm160_vm1, %v53_v39 }
  0xe6   :  { %v217_v50 = vpop.f32.mrf.mxu1 }
  0xf4   :  { %v202_v41 = vpop.f32.mrf.mxu0 }
  0xf5   :  { %937 = vmatmul.msk.f32.vlgmr.msra.gmra.mxu3 %vm394_vm11, %v202_v41  ;;  %v904_v41 = vsel %vm140_vm4, 1.0, %v1005_v15  ;;  %vm655_vm4 = vcmask 523264  }
  0xf6   :  { %627 = vxpose.xlu1.b32.cont [5/8] (short) (narrow) %v904_v41, 16  ;;  %v718_v41 = vand.u32 7, %v702_v33 }
  0xf8   :  { %vm734_vm10 = vcmp.eq.s32.totalorder %v718_v41, %v1124_v13 }
  0xfc   :  { %v205_v42 = vpop.f32.mrf.mxu0 }
  0xfd   :  { %938 = vmatmul.msk.f32.gmra.mxu3 %vm394_vm11, %v205_v42 }
  0xfe   :  { %628 = vxpose.xlu1.b32.cont [6/8] (short) (narrow) %v905_v48, 16 }
 0x104   :  { %v208_v43 = vpop.f32.mrf.mxu0  ;;  %v220_v52 = vpop.f32.mrf.mxu1 }
 0x105   :  { %939 = vmatmul.msk.f32.gmra.mxu3 %vm394_vm11, %v208_v43 }
 0x10c   :  { %v211_v46 = vpop.f32.mrf.mxu0  ;;  %v223_v53 = vpop.f32.mrf.mxu1 }
 0x10d   :  { %940 = vmatmul.msk.f32.gmra.mxu3 %vm394_vm11, %v211_v46 }
 0x114   :  { %v214_v49 = vpop.f32.mrf.mxu0  ;;  %v273_v5 = vpop.f32.mrf.mxu1 }
 0x115   :  { %941 = vmatmul.msk.f32.gmra.mxu3 %vm394_vm11, %v214_v49  ;;  %v274_v6 = vadd.f32 %v1268_v4, %v273_v5 }
 0x117   :  { %v297_v9 = vmax.f32 %v274_v6, 0.0 }
 0x119   :  { %924 = vmatmul.msk.f32.vlgmr.msra.gmra.mxu2 %vm160_vm1, %v297_v9 }
 0x11c   :  { %v276_v16 = vpop.f32.mrf.mxu1 }
 0x11d   :  { %942 = vmatmul.msk.f32.gmra.mxu3 %vm394_vm11, %v217_v50  ;;  %v277_v17 = vadd.f32 %v1268_v4, %v276_v16 }
 0x11f   :  { %v298_v20 = vmax.f32 %v277_v17, 0.0 }
 0x121   :  { %925 = vmatmul.msk.f32.gmra.mxu2 %vm160_vm1, %v298_v20 }
 0x124   :  { %v279_v23 = vpop.f32.mrf.mxu1 }
 0x125   :  { %943 = vmatmul.msk.f32.gmra.mxu3 %vm394_vm11, %v220_v52  ;;  %v280_v24 = vadd.f32 %v1268_v4, %v279_v23 }
 0x127   :  { %v299_v26 = vmax.f32 %v280_v24, 0.0 }
 0x129   :  { %926 = vmatmul.msk.f32.gmra.mxu2 %vm160_vm1, %v299_v26 }
 0x12c   :  { %v282_v29 = vpop.f32.mrf.mxu1 }
 0x12d   :  { %944 = vmatmul.msk.f32.gmra.mxu3 %vm394_vm11, %v223_v53  ;;  %v283_v30 = vadd.f32 %v1268_v4, %v282_v29 }
 0x12f   :  { %v300_v32 = vmax.f32 %v283_v30, 0.0  ;;  %v705_v30 = vadd.s32 120, %v1189_v36 }
 0x131   :  { %927 = vmatmul.msk.f32.gmra.mxu2 %vm160_vm1, %v300_v32  ;;  %v703_v32 = vadd.s32 104, %v1189_v36 }
 0x133   :  { %v719_v40 = vand.u32 7, %v703_v32 }
 0x134   :  { %v285_v35 = vpop.f32.mrf.mxu1 }
 0x135   :  { %946 = vmatmul.msk.f32.vlgmr.msrb.gmra.mxu3 %vm394_vm11, %v465_v54  ;;  %v286_v37 = vadd.f32 %v1268_v4, %v285_v35  ;;  %v132_v54 = vpop.permute.xlu2 %131  ;;  %v700_v35 = vadd.s32 80, %v1189_v36  ;;  %vm735_vm9 = vcmp.eq.s32.totalorder %v719_v40, %v1124_v13  ;;  %v707_v40 = vand.u32 7, %v1280_v12 }
 0x136   :  { %vm142_vm6 = vcmp.eq.s32.totalorder %v132_v54, %v1124_v13 }
 0x137   :  { %v301_v39 = vmax.f32 %v286_v37, 0.0  ;;  %v699_v37 = vadd.s32 72, %v1189_v36 }
 0x139   :  { %928 = vmatmul.msk.f32.gmra.mxu2 %vm160_vm1, %v301_v39  ;;  %v715_v54 = vand.u32 7, %v699_v37 }
 0x13b   :  { %vm1373_vm13 = vcmp.eq.s32.totalorder %v715_v54, %v1124_v13  ;;  %v1009_v54 = vmov 16.0  }
 0x13c   :  { %v288_v42 = vpop.f32.mrf.mxu1  ;;  %1000 = vrcp.f32 %v1009_v54 }
 0x13d   :  { %947 = vmatmul.msk.f32.gmra.mxu3 %vm394_vm11, %v467_v55  ;;  %v289_v43 = vadd.f32 %v1268_v4, %v288_v42  ;;  %v906_v55 = vsel %vm142_vm6, 1.0, %v1005_v15 }
 0x13e   :  { %629 = vxpose.xlu1.b32.cont [7/8] (short) (narrow) %v906_v55, 16 }
 0x13f   :  { %v302_v46 = vmax.f32 %v289_v43, 0.0  ;;  %v717_v43 = vand.u32 7, %v701_v34 }
 0x141   :  { %929 = vmatmul.msk.f32.gmra.mxu2 %vm160_vm1, %v302_v46 }
 0x144   :  { %v291_v49 = vpop.f32.mrf.mxu1 }
 0x145   :  { %948 = vmatmul.msk.f32.gmra.mxu3 %vm394_vm11, %v469_v56  ;;  %v292_v50 = vadd.f32 %v1268_v4, %v291_v49  ;;  %v979_v49 = vsel %vm735_vm9, 1.0, %v1005_v15 }
 0x147   :  { %v303_v53 = vmax.f32 %v292_v50, 0.0 }
 0x149   :  { %930 = vmatmul.msk.f32.gmra.mxu2 %vm160_vm1, %v303_v53  ;;  %v978_v53 = vsel %vm734_vm10, 1.0, %v1005_v15 }
 0x14c   :  { %v294_v56 = vpop.f32.mrf.mxu1 }
 0x14d   :  { %949 = vmatmul.msk.f32.gmra.mxu3 %vm394_vm11, %v471_v57  ;;  %v295_v57 = vadd.f32 %v1268_v4, %v294_v56 }
 0x155   :  { %950 = vmatmul.msk.f32.gmra.mxu3 %vm394_vm11, %v473_v58 }
 0x15d   :  { %951 = vmatmul.msk.f32.gmra.mxu3 %vm394_vm11, %v475_v60  ;;  %v304_v60 = vmax.f32 %v295_v57, 0.0 }
 0x15f   :  { %931 = vmatmul.msk.f32.gmra.mxu2 %vm160_vm1, %v304_v60 }
 0x165   :  { %952 = vmatmul.msk.f32.gmra.mxu3 %vm394_vm11, %v477_v61  ;;  %v135_v61 = vpop.permute.xlu0 %134 }
 0x166   :  { %vm143_vm7 = vcmp.eq.s32.totalorder %v135_v61, %v1124_v13  ;;  %v782_v61 = vmul.f32 0.25, %v978_v53 }
 0x167   :  { %v907_v62 = vsel %vm143_vm7, 1.0, %v1005_v15  ;;  %vm723_vm7 = vcmp.eq.s32.totalorder %v707_v40, %v1124_v13  ;;  %v998_v40 = vld [vmem:[%s1456_s9] ss:$0 sm:$0xff] }
 0x168   :  { %630 = vxpose.xlu1.b32.end [8/8] (short) (narrow) %v907_v62, 16 }
 0x16d   :  { %953 = vmatmul.msk.f32.gmra.mxu3 %vm394_vm11, %v479_v63  ;;  %vm733_vm11 = vcmp.eq.s32.totalorder %v717_v43, %v1124_v13 }
 0x16e   :  { %v977_v62 = vsel %vm733_vm11, 1.0, %v1005_v15 }
 0x178   :  { %v1256_v0 = vpop.f32.mrf.mxu3 }
 0x180   :  { %v1258_v1 = vpop.f32.mrf.mxu3 }
 0x188   :  { %v1260_v2 = vpop.f32.mrf.mxu3 }
 0x190   :  { %v1271_v7 = vpop.f32.mrf.mxu3 }
 0x198   :  { %v1285_v18 = vpop.f32.mrf.mxu3 }
 0x1a0   :  { %v1292_v25 = vpop.f32.mrf.mxu3 }
 0x1a8   :  { %v458_v31 = vpop.f32.mrf.mxu3 }
 0x1b0   :  { %v461_v38 = vpop.f32.mrf.mxu3 }
 0x1b8   :  { %v516_v44 = vpop.f32.mrf.mxu3 }
 0x1b9   :  { %v540_v45 = vmul.f32 %v516_v44, %v1256_v0  ;;  %v716_v44 = vand.u32 7, %v700_v35 }
 0x1bb   :  { %956 = vmatmul.msk.f32.vlgmr.msrb.gmra.mxu0 %vm160_vm1, %v540_v45  ;;  %v698_v45 = vadd.s32 64, %v1189_v36  ;;  %vm732_vm12 = vcmp.eq.s32.totalorder %v716_v44, %v1124_v13 }
 0x1bd   :  { %v714_v57 = vand.u32 7, %v698_v45 }
 0x1bf   :  { %vm1383_vm14 = vcmp.eq.s32.totalorder %v714_v57, %v1124_v13  ;;  %v1001_v57 = vpop.eup %1000 }
 0x1c0   :  { %v519_v51 = vpop.f32.mrf.mxu3  ;;  %vm844_vm9 = vweird.f32 %v1001_v57 }
 0x1c1   :  { %v541_v52 = vmul.f32 %v519_v51, %v1258_v1 }
 0x1c3   :  { %957 = vmatmul.msk.f32.gmra.mxu0 %vm160_vm1, %v541_v52 }
 0x1c8   :  { %v522_v58 = vpop.f32.mrf.mxu3 }
 0x1c9   :  { %v542_v59 = vmul.f32 %v522_v58, %v1260_v2  ;;  %v783_v58 = vmul.f32 0.25, %v979_v49 }
 0x1cb   :  { %958 = vmatmul.msk.f32.gmra.mxu0 %vm160_vm1, %v542_v59 }
 0x1d0   :  { %v525_v63 = vpop.f32.mrf.mxu3 }
 0x1d1   :  { %v543_v0 = vmul.f32 %v525_v63, %v1271_v7  ;;  %v352_v7 = vpop.f32.mrf.mxu2 }
 0x1d2   :  { %v353_v14 = vadd.f32 %v1336_v11, %v352_v7 }
 0x1d3   :  { %959 = vmatmul.msk.f32.gmra.mxu0 %vm160_vm1, %v543_v0  ;;  %v697_v0 = vadd.s32 56, %v1189_v36 }
 0x1d4   :  { %v639_v34 = vpop.trf.xlu1 }
 0x1d8   :  { %v528_v1 = vpop.f32.mrf.mxu3 }
 0x1d9   :  { %v544_v3 = vmul.f32 %v528_v1, %v1285_v18  ;;  %v1331_v10 = vpop.f32.mrf.mxu2  ;;  %v696_v1 = vadd.s32 48, %v1189_v36 }
 0x1db   :  { %960 = vmatmul.msk.f32.gmra.mxu0 %vm160_vm1, %v544_v3  ;;  %v695_v3 = vadd.s32 40, %v1189_v36  ;;  %v712_v7 = vand.u32 7, %v696_v1 }
 0x1dc   :  { %v640_v45 = vpop.trf.xlu1 }
 0x1dd   :  { %vm728_vm0 = vcmp.eq.s32.totalorder %v712_v7, %v1124_v13 }
 0x1de   :  { %v972_v35 = vsel %vm728_vm0, 1.0, %v1005_v15 }
 0x1e0   :  { %v531_v2 = vpop.f32.mrf.mxu3 }
 0x1e1   :  { %v545_v4 = vmul.f32 %v531_v2, %v1292_v25  ;;  %v1339_v17 = vpop.f32.mrf.mxu2 }
 0x1e3   :  { %961 = vmatmul.msk.f32.gmra.mxu0 %vm160_vm1, %v545_v4 }
 0x1e8   :  { %v534_v5 = vpop.f32.mrf.mxu3 }
 0x1e9   :  { %v546_v6 = vmul.f32 %v534_v5, %v458_v31  ;;  %v361_v20 = vpop.f32.mrf.mxu2  ;;  %v704_v31 = vadd.s32 112, %v1189_v36  ;;  %v976_v5 = vsel %vm732_vm12, 1.0, %v1005_v15 }
 0x1ea   :  { %v362_v2 = vadd.f32 %v1336_v11, %v361_v20  ;;  %v975_v20 = vsel %vm1373_vm13, 1.0, %v1005_v15 }
 0x1eb   :  { %962 = vmatmul.msk.f32.gmra.mxu0 %vm160_vm1, %v546_v6  ;;  %v720_v39 = vand.u32 7, %v704_v31  ;;  %v692_v31 = vadd.s32 16, %v1189_v36 }
 0x1ed   :  { %vm736_vm8 = vcmp.eq.s32.totalorder %v720_v39, %v1124_v13  ;;  %v776_v39 = vmul.f32 0.25, %v972_v35 }
 0x1ee   :  { %v980_v48 = vsel %vm736_vm8, 1.0, %v1005_v15  ;;  %vm829_vm8 = vcmask 64512  }
 0x1ef   :  { %v784_v52 = vmul.f32 0.25, %v980_v48  ;;  %v706_v48 = vand.u32 7, %v1189_v36 }
 0x1f0   :  { %v537_v8 = vpop.f32.mrf.mxu3 }
 0x1f1   :  { %v547_v9 = vmul.f32 %v537_v8, %v461_v38  ;;  %v364_v22 = vpop.f32.mrf.mxu2  ;;  %v721_v38 = vand.u32 7, %v705_v30  ;;  %v781_v8 = vmul.f32 0.25, %v977_v62 }
 0x1f2   :  { %v365_v59 = vadd.f32 %v1336_v11, %v364_v22 }
 0x1f3   :  { %963 = vmatmul.msk.f32.gmra.mxu0 %vm160_vm1, %v547_v9  ;;  %vm737_vm1 = vcmp.eq.s32.totalorder %v721_v38, %v1124_v13  ;;  %v713_v9 = vand.u32 7, %v697_v0  ;;  %v708_v38 = vand.u32 7, %v692_v31 }
 0x1f4   :  { %v981_v47 = vsel %vm737_vm1, 1.0, %v1005_v15  ;;  %vm722_vm1 = vcmp.eq.s32.totalorder %v706_v48, %v1124_v13 }
 0x1f5   :  { %v785_v51 = vmul.f32 0.25, %v981_v47  ;;  %vm729_vm15 = vcmp.eq.s32.totalorder %v713_v9, %v1124_v13  ;;  %vm724_vm6 = vcmp.eq.s32.totalorder %v708_v38, %v1124_v13  ;;  %v966_v49 = vsel %vm722_vm1, 1.0, %v1005_v15 }
 0x1f6   :  { %v973_v33 = vsel %vm729_vm15, 1.0, %v1005_v15  ;;  %v968_v44 = vsel %vm724_vm6, 1.0, %v1005_v15 }
 0x1f7   :  { %788 = vmatpush.msrb.mxu2 %v785_v51  ;;  %v777_v37 = vmul.f32 0.25, %v973_v33 }
 0x1f9   :  { %v367_v24 = vpop.f32.mrf.mxu2  ;;  %789 = vmatpush.msrb.mxu2 %v784_v52 }
 0x1fa   :  { %v368_v55 = vadd.f32 %v1336_v11, %v367_v24  ;;  %v780_v24 = vmul.f32 0.25, %v976_v5 }
 0x1fb   :  { %790 = vmatpush.msrb.mxu2 %v783_v58  ;;  %v821_v58 = vpop.permute.xlu0 %820 }
 0x1fd   :  { %791 = vmatpush.msrb.mxu2 %v782_v61  ;;  %v840_v61 = vmul.f32 16.0, %v1001_v57 }
 0x1ff   :  { %792 = vmatpush.msrb.mxu2 %v781_v8  ;;  %v841_v1 = vsub.f32 1.0, %v840_v61 }
 0x201   :  { %v370_v27 = vpop.f32.mrf.mxu2  ;;  %793 = vmatpush.msrb.mxu2 %v780_v24 }
 0x202   :  { %v371_v46 = vadd.f32 %v1336_v11, %v370_v27  ;;  %v693_v27 = vadd.s32 24, %v1189_v36 }
 0x209   :  { %v373_v29 = vpop.f32.mrf.mxu2 }
 0x20a   :  { %v374_v42 = vadd.f32 %v1336_v11, %v373_v29 }
 0x238   :  { %v589_v16 = vpop.f32.mrf.mxu0 }
 0x239   :  { %v1341_v18 = vmul.f32 %v589_v16, %v353_v14  ;;  %v694_v14 = vadd.s32 32, %v1189_v36  ;;  %v359_v16 = vadd.f32 %v1336_v11, %v1339_v17  ;;  %v974_v17 = vsel %vm1383_vm14, 1.0, %v1005_v15  ;;  %v825_v36 = vld [vmem:[%s1458_s1] sm:$0xff] }
 0x23b   :  { %v710_v30 = vand.u32 7, %v694_v14 }
 0x23d   :  { %vm726_vm3 = vcmp.eq.s32.totalorder %v710_v30, %v1124_v13 }
 0x240   :  { %v1343_v19 = vpop.f32.mrf.mxu0 }
 0x248   :  { %v1345_v21 = vpop.f32.mrf.mxu0 }
 0x249   :  { %v615_v32 = vmul.f32 %v1345_v21, %v359_v16 }
 0x250   :  { %v1347_v23 = vpop.f32.mrf.mxu0 }
 0x251   :  { %v616_v29 = vmul.f32 %v1347_v23, %v362_v2 }
 0x258   :  { %v601_v25 = vpop.f32.mrf.mxu0 }
 0x259   :  { %v617_v22 = vmul.f32 %v601_v25, %v365_v59  ;;  %v779_v25 = vmul.f32 0.25, %v975_v20 }
 0x25b   :  { %794 = vmatpush.msrb.mxu2 %v779_v25 }
 0x260   :  { %v604_v26 = vpop.f32.mrf.mxu0 }
 0x261   :  { %v618_v4 = vmul.f32 %v604_v26, %v368_v55  ;;  %v711_v26 = vand.u32 7, %v695_v3  ;;  %v816_v55 = vpop.permute.xlu2 %815 }
 0x263   :  { %vm727_vm2 = vcmp.eq.s32.totalorder %v711_v26, %v1124_v13 }
 0x264   :  { %v971_v21 = vsel %vm727_vm2, 1.0, %v1005_v15 }
 0x265   :  { %v775_v41 = vmul.f32 0.25, %v971_v21 }
 0x268   :  { %v607_v28 = vpop.f32.mrf.mxu0 }
 0x269   :  { %v619_v60 = vmul.f32 %v607_v28, %v371_v46  ;;  %v356_v28 = vadd.f32 %v1336_v11, %v1331_v10  ;;  %v778_v10 = vmul.f32 0.25, %v974_v17  ;;  %v709_v11 = vand.u32 7, %v693_v27 }
 0x26a   :  { %v772_v46 = vmul.f32 0.25, %v968_v44 }
 0x26b   :  { %v614_v23 = vmul.f32 %v1343_v19, %v356_v28  ;;  %795 = vmatpush.msrb.mxu2 %v778_v10  ;;  %vm725_vm5 = vcmp.eq.s32.totalorder %v709_v11, %v1124_v13  ;;  %v970_v19 = vsel %vm726_vm3, 1.0, %v1005_v15 }
 0x26c   :  { %v774_v43 = vmul.f32 0.25, %v970_v19 }
 0x26d   :  { %796 = vmatpush.msrb.mxu2 %v777_v37 }
 0x26f   :  { %797 = vmatpush.msrb.mxu2 %v776_v39 }
 0x270   :  { %v610_v50 = vpop.f32.mrf.mxu0 }
 0x271   :  { %v620_v56 = vmul.f32 %v610_v50, %v374_v42  ;;  %v969_v42 = vsel %vm725_vm5, 1.0, %v1005_v15  ;;  %798 = vmatpush.msrb.mxu2 %v775_v41  ;;  %v770_v50 = vmul.f32 0.25, %v966_v49 }
 0x272   :  { %v773_v12 = vmul.f32 0.25, %v969_v42 }
 0x273   :  { %670 = vmatpush.msra.mxu1 %v620_v56  ;;  %799 = vmatpush.msrb.mxu2 %v774_v43  ;;  %v999_v43 = vld [vmem:[%s1457_s10] ss:$0 sm:$0xff] }
 0x275   :  { %671 = vmatpush.msra.mxu1 %v619_v60  ;;  %800 = vmatpush.msrb.mxu2 %v773_v12 }
 0x277   :  { %672 = vmatpush.msra.mxu1 %v618_v4  ;;  %801 = vmatpush.msrb.mxu2 %v772_v46  ;;  %v842_v4 = vmul.f32 %v1001_v57, %v841_v1 }
 0x279   :  { %673 = vmatpush.msra.mxu1 %v617_v22  ;;  %v843_v8 = vadd.f32 %v1001_v57, %v842_v4 }
 0x27b   :  { %674 = vmatpush.msra.mxu1 %v616_v29  ;;  %v845_v14 = vsel %vm844_vm9, %v1001_v57, %v843_v8 }
 0x27d   :  { %675 = vmatpush.msra.mxu1 %v615_v32 }
 0x27f   :  { %676 = vmatpush.msra.mxu1 %v614_v23 }
 0x281   :  { %677 = vmatpush.msra.mxu1 %v1341_v18  ;;  %v967_v18 = vsel %vm723_vm7, 1.0, %v1005_v15  ;;  %v826_v15 = vld [vmem:[%s1458_s1 + $0x8] sm:$0xff] }
 0x282   :  { %964 = vmatmul.msk.f32.vlgmr.msra.gmra.mxu1 %vm655_vm4, %v639_v34  ;;  %v771_v47 = vmul.f32 0.25, %v967_v18 }
 0x284   :  { %802 = vmatpush.msrb.mxu2 %v771_v47 }
 0x286   :  { %803 = vmatpush.msrb.mxu2 %v770_v50 }
 0x28a   :  { %965 = vmatmul.msk.f32.gmra.mxu1 %vm655_vm4, %v640_v45 }
 0x2ff   :  { %v679_v51 = vpop.f32.mrf.mxu1 }
 0x300   :  { %804 = vmatmul.f32.vlgmr.msrb.gmra.mxu2 %v679_v51 }
 0x307   :  { %v682_v52 = vpop.f32.mrf.mxu1 }
 0x308   :  { %807 = vmatmul.f32.gmra.mxu2 %v682_v52 }
 0x383   :  { %v805_v53 = vpop.f32.mrf.mxu2 }
 0x384   :  { %v823_v56 = vmul.f32 %v816_v55, %v805_v53 }
 0x386   :  { %v827_v59 = vadd.f32 %v825_v36, %v823_v56 }
 0x388   :  { %v830_v63 = vsel %vm829_vm8, %v827_v59, 0.0 }
 0x38b   :  { %v808_v13 = vpop.f32.mrf.mxu2 }
 0x38c   :  { %v824_v60 = vmul.f32 %v821_v58, %v808_v13 }
 0x38e   :  { %v828_v62 = vadd.f32 %v826_v15, %v824_v60 }
 0x390   :  { %v831_v0 = vsel %vm829_vm8, %v828_v62, 0.0 }
 0x391   :  { %v832_v3 = vadd.f32 %v831_v0, %v830_v63 }
 0x393   :  { %v833_v2 = vrot.slane %v832_v3, 4 }
 0x395   :  { %v834_v5 = vadd.f32 %v833_v2, %v832_v3 }
 0x397   :  { %v835_v6 = vrot.slane %v834_v5, 2 }
 0x399   :  { %v836_v9 = vadd.f32 %v835_v6, %v834_v5 }
 0x39b   :  { %v837_v7 = vrot.slane %v836_v9, 1 }
 0x39d   :  { %v838_v16 = vadd.f32 %v837_v7, %v836_v9 }
 0x39f   :  { %v846_v22 = vmul.f32 %v845_v14, %v838_v16 }
 0x3a1   :  { %v847_v20 = vsub.f32 %v827_v59, %v846_v22  ;;  %v848_v24 = vsub.f32 %v828_v62, %v846_v22 }
 0x3a3   :  { %v849_v26 = vmul.f32 %v847_v20, %v847_v20  ;;  %v850_v27 = vmul.f32 %v848_v24, %v848_v24 }
 0x3a5   :  { %v851_v28 = vsel %vm829_vm8, %v849_v26, 0.0  ;;  %v852_v29 = vsel %vm829_vm8, %v850_v27, 0.0 }
 0x3a6   :  { %v853_v17 = vadd.f32 %v852_v29, %v851_v28 }
 0x3a8   :  { %v854_v25 = vrot.slane %v853_v17, 4 }
 0x3aa   :  { %v855_v30 = vadd.f32 %v854_v25, %v853_v17 }
 0x3ac   :  { %v856_v31 = vrot.slane %v855_v30, 2 }
 0x3ae   :  { %v857_v32 = vadd.f32 %v856_v31, %v855_v30 }
 0x3b0   :  { %v858_v33 = vrot.slane %v857_v32, 1 }
 0x3b2   :  { %v859_v10 = vadd.f32 %v858_v33, %v857_v32 }
 0x3b4   :  { %v860_v11 = vmul.f32 %v859_v10, %v845_v14 }
 0x3b6   :  { %v861_v23 = vadd.f32 1e-05, %v860_v11 }
 0x3b8   :  { %1002 = vrsqrt.f32 %v861_v23  ;;  %vm868_vm11 = vweird.f32 %v861_v23 }
 0x3be   :  { %v1003_v34 = vpop.eup %1002 }
 0x3bf   :  { %v863_v35 = vmul.f32 %v1003_v34, %v861_v23  ;;  %vm869_vm10 = vweird.f32 %v1003_v34 }
 0x3c0   :  { %vm870_vm12 = vmor %vm868_vm11, %vm869_vm10 }
 0x3c1   :  { %v864_v37 = vmul.f32 %v1003_v34, %v863_v35 }
 0x3c3   :  { %v865_v38 = vmul.f32 0.5, %v864_v37 }
 0x3c5   :  { %v866_v21 = vsub.f32 1.5, %v865_v38 }
 0x3c7   :  { %v867_v39 = vmul.f32 %v1003_v34, %v866_v21 }
 0x3c9   :  { %v871_v19 = vsel %vm870_vm12, %v1003_v34, %v867_v39 }
 0x3ca   :  { %v872_v41 = vmul.f32 %v871_v19, %v847_v20  ;;  %v873_v42 = vmul.f32 %v871_v19, %v848_v24 }
 0x3cc   :  { %v878_v44 = vmul.f32 %v998_v40, %v872_v41  ;;  %v879_v12 = vmul.f32 %v998_v40, %v873_v42 }
 0x3ce   :  { %v884_v45 = vadd.f32 %v999_v43, %v878_v44  ;;  %v885_v18 = vadd.f32 %v999_v43, %v879_v12 }
 0x3d0   :  { %886 = vst.msk [vmem:[%s1459_s11] sm:$0xff] %vm829_vm8, %v884_v45 }
 0x3d1   :  { %887 = vst.msk [vmem:[%s1459_s11 + $0x8] sm:$0xff] %vm829_vm8, %v885_v18 }

</bundles_post_ra>
